<compile_context>
chip_gen: v5e
topology: v5e:2x2
jax: 0.10.0
libtpu: 0.0.40
codegen_flags: <defaults>
</compile_context>

<pallas_src>
import functools

import jax
import jax.numpy as jnp
from jax import lax
from jax.experimental import pallas as pl
from jax.experimental.pallas import tpu as pltpu

_MiB = 1024 * 1024
_SMALL_BATCH = 512      # above this, always grid over rows (v7x megacore wants >= 2 steps)
_SMALL_BYTES = 4 * _MiB  # single-block path only below this total footprint


def _vmem_capacity_bytes():
    """Physical VMEM per TensorCore (128 MiB on v5e/v6e, 64 MiB on v7x)."""
    try:
        cap = int(pltpu.get_tpu_info().vmem_capacity_bytes)
        if cap > 0:
            return cap
    except Exception:
        pass
    return 64 * _MiB  # conservative fallback (v7x per-TC)


def _cost(batch, in_f, out_f, itemsize):
    return pl.CostEstimate(
        flops=2 * batch * in_f * out_f,
        transcendentals=0,
        bytes_accessed=itemsize * (batch * in_f + out_f * in_f + out_f + batch * out_f),
    )


def _pick_tile_b(batch, per_row_bytes, budget_bytes):
    """Largest row tile from a fixed set that (a) fits double-buffered in budget
    and (b) yields >= 2 grid steps (so both v7x TensorCores get work)."""
    for tb in (2048, 1024, 512, 256):
        if 2 * tb > batch:
            continue
        if 2 * tb * per_row_bytes <= budget_bytes:
            return tb
    return 256


# ----------------------------------------------------------------------------- kernels
def _linear_kernel(compute_dtype, x_ref, w_ref, b_ref, o_ref):
    """y = x @ W^T + b in one MXU call, f32 accumulate.

    x_ref: (rows, in)  w_ref: (out, in) (PyTorch layout)  b_ref: (1, out)  o_ref: (rows, out)
    """
    acc = lax.dot_general(
        x_ref[...].astype(compute_dtype),
        w_ref[...].astype(compute_dtype),
        dimension_numbers=(((1,), (1,)), ((), ())),  # contract in_features; MXU handles W^T natively
        preferred_element_type=jnp.float32,
    )
    o_ref[...] = (acc + b_ref[...]).astype(o_ref.dtype)


def _linear_mnk_kernel(compute_dtype, x_ref, w_ref, b_ref, o_ref, acc_ref):
    """Row/col/K-tiled linear: accumulate over the K ("arbitrary", last) grid axis."""
    k = pl.program_id(2)

    @pl.when(k == 0)
    def _():
        acc_ref[...] = jnp.zeros_like(acc_ref)

    acc_ref[...] += lax.dot_general(
        x_ref[...].astype(compute_dtype),
        w_ref[...].astype(compute_dtype),
        dimension_numbers=(((1,), (1,)), ((), ())),
        preferred_element_type=jnp.float32,
    )

    @pl.when(k == pl.num_programs(2) - 1)
    def _():
        o_ref[...] = (acc_ref[...] + b_ref[...]).astype(o_ref.dtype)


# ----------------------------------------------------------------------------- wrappers
def _row_tiled(x, weight, bias2d, tile_b, compute_dtype, vmem_limit, single_buffer_params):
    batch, in_f = x.shape
    out_f = weight.shape[0]
    grid_m = pl.cdiv(batch, tile_b)  # masked tail block if batch % tile_b != 0
    const_kw = dict(pipeline_mode=pl.Buffered(1)) if single_buffer_params else {}
    return pl.pallas_call(
        functools.partial(_linear_kernel, compute_dtype),
        out_shape=jax.ShapeDtypeStruct((batch, out_f), x.dtype),
        grid=(grid_m,),
        in_specs=[
            pl.BlockSpec((tile_b, in_f), lambda i: (i, 0)),
            pl.BlockSpec((out_f, in_f), lambda i: (0, 0), **const_kw),  # resident weight
            pl.BlockSpec((1, out_f), lambda i: (0, 0), **const_kw),     # resident bias
        ],
        out_specs=pl.BlockSpec((tile_b, out_f), lambda i: (i, 0)),
        compiler_params=pltpu.CompilerParams(
            dimension_semantics=("parallel",),
            vmem_limit_bytes=vmem_limit,
        ),
        cost_estimate=_cost(batch, in_f, out_f, x.dtype.itemsize),
    )(x, weight, bias2d)


def _mnk_tiled(x, weight, bias2d, tile_b, tile_n, tile_k, compute_dtype, vmem_limit):
    batch, in_f = x.shape
    out_f = weight.shape[0]
    grid = (pl.cdiv(batch, tile_b), out_f // tile_n, in_f // tile_k)  # K last, "arbitrary"
    return pl.pallas_call(
        functools.partial(_linear_mnk_kernel, compute_dtype),
        out_shape=jax.ShapeDtypeStruct((batch, out_f), x.dtype),
        grid=grid,
        in_specs=[
            pl.BlockSpec((tile_b, tile_k), lambda i, j, k: (i, k)),
            pl.BlockSpec((tile_n, tile_k), lambda i, j, k: (j, k)),
            pl.BlockSpec((1, tile_n), lambda i, j, k: (0, j)),
        ],
        out_specs=pl.BlockSpec((tile_b, tile_n), lambda i, j, k: (i, j)),
        scratch_shapes=[pltpu.VMEM((tile_b, tile_n), jnp.float32)],
        compiler_params=pltpu.CompilerParams(
            dimension_semantics=("parallel", "parallel", "arbitrary"),
            vmem_limit_bytes=vmem_limit,
        ),
        cost_estimate=_cost(batch, in_f, out_f, x.dtype.itemsize),
    )(x, weight, bias2d)


def model_parallel_linear(x, weight, bias, *, compute_dtype=None):
    """Pallas equivalent of ModelParallelLayer(nn.Linear(in, out), device_ids)(x).

    x      : [batch, in_features]
    weight : [out_features, in_features]   (PyTorch Linear layout, used as-is)
    bias   : [out_features]
    compute_dtype : optional MXU operand dtype (e.g. jnp.bfloat16 for non-toy
        feature sizes on v6e/v7x; accumulation stays f32). Default: x.dtype.
    """
    batch, in_features = x.shape
    out_features = weight.shape[0]
    if compute_dtype is None:
        compute_dtype = x.dtype
    bias2d = bias.reshape(1, out_features)  # metadata-only reshape

    itemsize = jnp.dtype(x.dtype).itemsize
    weight_bytes = out_features * in_features * itemsize
    total_bytes = (batch * in_features + batch * out_features) * itemsize + weight_bytes

    capacity = _vmem_capacity_bytes()
    vmem_limit = min(capacity * 3 // 4, 96 * _MiB)  # ~48 MiB on v7x, ~96 MiB on v5e/v6e
    budget = vmem_limit - 2 * _MiB                  # headroom for compiler scratch
    per_row_bytes = (in_features + out_features) * itemsize

    # --- Path 1: tiny problem -> one VMEM block, one MXU call, zero grid steps.
    if batch <= _SMALL_BATCH and total_bytes <= min(_SMALL_BYTES, capacity // 8):
        return pl.pallas_call(
            functools.partial(_linear_kernel, compute_dtype),
            out_shape=jax.ShapeDtypeStruct((batch, out_features), x.dtype),
            cost_estimate=_cost(batch, in_features, out_features, itemsize),
        )(x, weight, bias2d)

    # --- Path 2: weight small enough to keep VMEM-resident -> row-tiled "parallel" grid.
    if 2 * weight_bytes + 2 * 256 * per_row_bytes <= budget:
        tile_b = _pick_tile_b(batch, per_row_bytes, budget - 2 * weight_bytes)
        try:
            return _row_tiled(x, weight, bias2d, tile_b, compute_dtype, vmem_limit,
                              single_buffer_params=True)
        except Exception:
            # pipeline_mode=pl.Buffered(1) unsupported on this jax build -> default buffering.
            return _row_tiled(x, weight, bias2d, tile_b, compute_dtype, vmem_limit,
                              single_buffer_params=False)

    # --- Path 3: weight too large to keep resident -> M/N/K tiling with f32 accumulator.
    if in_features % 128 == 0 and out_features % 128 == 0:
        tile_k = 512 if in_features % 512 == 0 else (256 if in_features % 256 == 0 else 128)
        tile_n = 256 if out_features % 256 == 0 else 128
        if batch >= 512:
            tile_b = 512
        elif batch >= 256:
            tile_b = 256
        else:
            tile_b = batch  # full-dim block satisfies the (8,128) rule
        return _mnk_tiled(x, weight, bias2d, tile_b, tile_n, tile_k, compute_dtype, vmem_limit)

    # TODO(synk): huge weights with non-128-aligned feature dims need masked K/N edge
    # blocks; fall back to the resident-weight path (may exceed the scoped VMEM limit
    # for extreme sizes).
    tile_b = _pick_tile_b(batch, per_row_bytes, max(budget - 2 * weight_bytes, 8 * _MiB))
    try:
        return _row_tiled(x, weight, bias2d, tile_b, compute_dtype, vmem_limit,
                          single_buffer_params=True)
    except Exception:
        return _row_tiled(x, weight, bias2d, tile_b, compute_dtype, vmem_limit,
                          single_buffer_params=False)


if __name__ == "__main__":
    key = jax.random.PRNGKey(0)
    kx, kw, kb, kx2 = jax.random.split(key, 4)

    # Wrapped layer: nn.Linear(32, 32).  DataParallel forward == single linear pass.
    batch, in_features, out_features = 16, 32, 32
    bound = 1.0 / jnp.sqrt(jnp.float32(in_features))
    weight = jax.random.uniform(kw, (out_features, in_features), dtype=jnp.float32,
                                minval=-bound, maxval=bound)
    bias = jax.random.uniform(kb, (out_features,), dtype=jnp.float32,
                              minval=-bound, maxval=bound)

    # Toy case (single-block path, matches the module's canonical usage).
    x = jax.random.normal(kx, (batch, in_features), dtype=jnp.float32)
    y = jax.block_until_ready(model_parallel_linear(x, weight, bias))
    y_ref = x @ weight.T + bias
    assert y.shape == (batch, out_features)
    assert jnp.allclose(y, y_ref, atol=1e-5, rtol=1e-5), "single-block path mismatch"

    # Larger batch: exercises the row-tiled "parallel" grid path (>= 2 grid steps).
    big_batch = 1024
    x_big = jax.random.normal(kx2, (big_batch, in_features), dtype=jnp.float32)
    y_big = jax.block_until_ready(model_parallel_linear(x_big, weight, bias))
    y_big_ref = x_big @ weight.T + bias
    assert jnp.allclose(y_big, y_big_ref, atol=1e-5, rtol=1e-5), "row-tiled path mismatch"

    print("KERNEL_OK")
</pallas_src>

<mosaic_0001>
module attributes {stable_mosaic.version = 11 : i64} {
  func.func @_linear_kernel(%arg0: memref<16x32xf32, #tpu.memory_space<vmem>>, %arg1: memref<32x32xf32, #tpu.memory_space<vmem>>, %arg2: memref<1x32xf32, #tpu.memory_space<vmem>>, %arg3: memref<16x32xf32, #tpu.memory_space<vmem>>) attributes {dimension_semantics = [], scalar_prefetch = 0 : i64, scratch_operands = 0 : i64, tpu.core_type = #tpu.core_type<tc>} {
    %c0 = arith.constant 0 : index
    %c0_0 = arith.constant 0 : index
    %0 = vector.load %arg0[%c0, %c0_0] : memref<16x32xf32, #tpu.memory_space<vmem>>, vector<16x32xf32>
    %c0_1 = arith.constant 0 : index
    %c0_2 = arith.constant 0 : index
    %1 = vector.load %arg1[%c0_1, %c0_2] : memref<32x32xf32, #tpu.memory_space<vmem>>, vector<32x32xf32>
    %cst = arith.constant dense<0.000000e+00> : vector<16x32xf32>
    %2 = tpu.matmul %0, %1, %cst {dimension_numbers = #tpu.dot_dimension_numbers<[1], [1], [0], [0], [0, 0, 1, 0], [], []>} : vector<16x32xf32>, vector<32x32xf32>, vector<16x32xf32> -> vector<16x32xf32>
    %c0_3 = arith.constant 0 : index
    %c0_4 = arith.constant 0 : index
    %3 = vector.load %arg2[%c0_3, %c0_4] : memref<1x32xf32, #tpu.memory_space<vmem>>, vector<1x32xf32>
    %4 = vector.broadcast %3 : vector<1x32xf32> to vector<16x32xf32>
    %5 = arith.addf %2, %4 : vector<16x32xf32>
    %c0_5 = arith.constant 0 : index
    %c0_6 = arith.constant 0 : index
    %6 = vector.load %arg3[%c0_5, %c0_6] : memref<16x32xf32, #tpu.memory_space<vmem>>, vector<16x32xf32>
    tpu.vector_store %arg3[%c0_5, %c0_6], %5 {strides = array<i32>} : memref<16x32xf32, #tpu.memory_space<vmem>>, vector<16x32xf32>,
    return
  }
}

</mosaic_0001>

<bundles_post_ra>
// kernel: tpu_custom_call.1
= control target key start
LH: loop header
LB: loop body
LE: loop exit
PB: predicated region body
PF: predicated region fallthrough
CT: control target
= control target key end

     0   :  { %8 = vsyncpa [#allocation3], 0  ;;  %s273_s0 = inlined_call_operand.hbm [shape: f32[16,32], index: 0, kind: input, shape index: {}]   ;;  %s274_s1 = inlined_call_operand.hbm [shape: f32[32,32], index: 1, kind: input, shape index: {}]   ;;  %s275_s2 = inlined_call_operand.vmem [shape: f32[1,32], index: 2, kind: input, shape index: {}]   ;;  %s276_s3 = inlined_call_operand.hbm [shape: f32[16,32], index: 3, kind: output, shape index: {}]  }
   0x1   :  { %9 = vsyncpa [#allocation6], 0 }
   0x2   :  { %10 = vsyncpa [#allocation4], 0  ;;  %s15_s14 = sshll.u32 %s273_s0, 4  ;;  %s215_s15 = smov [#allocation2]   ;;  %s16_s14 = int_to_ptr.hbm [resolvable:$true] %s15_s14 }
   0x3   :  { %s17_s16 = sshll.u32 %s215_s15, 4  ;;  %s28_s19 = sshll.u32 %s274_s1, 4  ;;  %s18_s16 = int_to_ptr.vmem [resolvable:$true] %s17_s16  ;;  %s29_s19 = int_to_ptr.hbm [resolvable:$true] %s28_s19 }
   0x4   :  { %s216_s20 = smov 128   ;;  %s217_s21 = smov 8  }
   0x5   :  { %23 = dma.hbm_to_vmem [thread:$0]  %s16_s14, 256, %s18_s16, [#allocation3], %s216_s20, %s216_s20, %s217_s21  }
   0x6   :  { %s218_s22 = smov [#allocation5]  }
   0x7   :  { %s30_s23 = sshll.u32 %s218_s22, 4  ;;  %s31_s23 = int_to_ptr.vmem [resolvable:$true] %s30_s23 }
   0x8   :  { %36 = dma.hbm_to_vmem [thread:$0]  %s29_s19, 512, %s31_s23, [#allocation6], %s216_s20, %s216_s20, %s217_s21  }
   0x9   :  { %209 = dma.done.wait [#allocation3], 256  }
   0xa   :  { %210 = vsyncadd [#allocation3], 4294967040 }
   0xb   :  { %211 = dma.done.wait [#allocation6], 512  }
   0xc   :  { %212 = vsyncadd [#allocation6], 4294966784  ;;  %vm57_vm0 = vcmask 261120   ;;  %v52_v0 = vld [vmem:[#allocation5 + $0x18] sm:$0xff]  ;;  %v51_v1 = vld [vmem:[#allocation5 + $0x10] sm:$0xff]  ;;  %s219_s24 = smov [#allocation7]  }
   0xd   :  { %121 = vmatpush.xpose.msk.msra.mxu0 %vm57_vm0, %v52_v0  ;;  %127 = vmatpush.xpose.msk.msra.mxu1 %vm57_vm0, %v52_v0  ;;  %v50_v2 = vld [vmem:[#allocation5 + $0x8] sm:$0xff]  ;;  %v49_v3 = vld [vmem:[#allocation5] sm:$0xff]  ;;  %v47_v4 = vld [vmem:[#allocation2] sm:$0xff]  ;;  %s105_s25 = sshll.u32 %s219_s24, 4  ;;  %s107_s28 = sshll.u32 %s276_s3, 4  ;;  %s106_s25 = int_to_ptr.vmem [resolvable:$true] %s105_s25  ;;  %s108_s28 = int_to_ptr.hbm [resolvable:$true] %s107_s28 }
   0xe   :  { %v48_v5 = vld [vmem:[#allocation2 + $0x8] sm:$0xff]  ;;  %v136_v6 = vld [vmem:[%s275_s2] ss:$0 sm:$0xff] }
  0x11   :  { %122 = vmatpush.xpose.msk.msra.mxu0 %vm57_vm0, %v51_v1  ;;  %128 = vmatpush.xpose.msk.msra.mxu1 %vm57_vm0, %v51_v1 }
  0x15   :  { %123 = vmatpush.xpose.msk.msra.mxu0 %vm57_vm0, %v50_v2  ;;  %129 = vmatpush.xpose.msk.msra.mxu1 %vm57_vm0, %v50_v2 }
  0x19   :  { %124 = vmatpush.xpose.msk.msra.mxu0 %vm57_vm0, %v49_v3  ;;  %130 = vmatpush.xpose.msk.msra.mxu1 %vm57_vm0, %v49_v3 }
  0x1c   :  { %125 = vmatmul.msk.f32.vlgmr.msra.gmra.mxu0 %vm57_vm0, %v47_v4  ;;  %126 = vmatmul.msk.f32.vlgmr.msra.gmra.mxu1 %vm57_vm0, %v48_v5 }
  0x99   :  { %v93_v7 = vpop.f32.mrf.mxu0  ;;  %v96_v8 = vpop.f32.mrf.mxu1 }
  0x9a   :  { %v94_v9 = vadd.f32 %v136_v6, %v93_v7  ;;  %v97_v10 = vadd.f32 %v136_v6, %v96_v8 }
  0x9c   :  { %99 = vst.msk [vmem:[#allocation7] sm:$0xff] %vm57_vm0, %v94_v9 }
  0x9d   :  { %100 = vst.msk [vmem:[#allocation7 + $0x8] sm:$0xff] %vm57_vm0, %v97_v10 }
  0x9e   :  { %113 = dma.vmem_to_hbm [thread:$0]  %s106_s25, 256, %s108_s28, [#allocation4], %s216_s20, %s216_s20, %s217_s21  }
  0x9f   :  { %213 = dma.done.wait [#allocation4], 256  }
  0xa0   :  { %214 = vsyncadd [#allocation4], 4294967040 }
  0xa1   :  { %118 = vsyncpa [#allocation3], 1 }
  0xa2   :  { %119 = vsyncpa [#allocation6], 1 }
  0xa3   :  { %120 = vsyncpa [#allocation4], 1 }

</bundles_post_ra>
